<compile_context>
chip_gen: v5e
topology: v5e:2x2
jax: 0.10.0
libtpu: 0.0.40
codegen_flags: <defaults>
</compile_context>

<pallas_src>
import jax
import jax.numpy as jnp
from jax.experimental import pallas as pl
from jax.experimental.pallas import tpu as pltpu


def _round_up(n, m):
    return ((n + m - 1) // m) * m


def decoder_kernel(x_ref, w1_ref, b1_ref, w2_ref, b2_ref, w3_ref, b3_ref, o_ref):
    # fc1 + ReLU (f32 accumulation + f32 epilogue).
    h = jnp.dot(x_ref[...], w1_ref[...], preferred_element_type=jnp.float32)
    h = jnp.maximum(h + b1_ref[...], 0.0)
    # fc2 + ReLU
    h = jnp.dot(h, w2_ref[...], preferred_element_type=jnp.float32)
    h = jnp.maximum(h + b2_ref[...], 0.0)
    # fc_out (no activation)
    o = jnp.dot(h, w3_ref[...], preferred_element_type=jnp.float32)
    o_ref[...] = (o + b3_ref[...]).astype(o_ref.dtype)


def decoder_forward(x, params, *, tile_b=256):
    """Fused decoder forward. x: (B, latent). Returns (B, output_dim)."""
    w1, b1, w2, b2, w3, b3 = params
    B, latent = x.shape
    hidden = w1.shape[1]
    out_dim = w3.shape[1]

    # --- lane-dense output: pad output dim to a multiple of 128 ---------------
    out_pad = _round_up(out_dim, 128)
    if out_pad != out_dim:
        w3p = jnp.pad(w3, ((0, 0), (0, out_pad - out_dim)))
        b3p = jnp.pad(b3, ((0, 0), (0, out_pad - out_dim)))
    else:
        w3p, b3p = w3, b3

    # --- batch tiling: tile must be a multiple of 8 (sublanes) ----------------
    tile_b = min(tile_b, _round_up(B, 8))
    B_pad = _round_up(B, tile_b)
    xp = jnp.pad(x, ((0, B_pad - B), (0, 0))) if B_pad != B else x

    grid = (B_pad // tile_b,)

    # Weights/biases: full blocks, constant index_map -> resident in VMEM,
    # DMA'd once for the whole grid.
    def resident(shape):
        return pl.BlockSpec(shape, lambda i: (0,) * len(shape))

    flops = 2 * B_pad * (latent * hidden + hidden * hidden + hidden * out_pad)
    bytes_accessed = 4 * (
        xp.size + w1.size + b1.size + w2.size + b2.size + w3p.size + b3p.size
        + B_pad * out_pad
    )

    out = pl.pallas_call(
        decoder_kernel,
        out_shape=jax.ShapeDtypeStruct((B_pad, out_pad), x.dtype),
        grid_spec=pl.GridSpec(
            grid=grid,
            in_specs=[
                pl.BlockSpec((tile_b, latent), lambda i: (i, 0)),   # x tile
                resident(w1.shape), resident(b1.shape),
                resident(w2.shape), resident(b2.shape),
                resident(w3p.shape), resident(b3p.shape),
            ],
            out_specs=pl.BlockSpec((tile_b, out_pad), lambda i: (i, 0)),
        ),
        compiler_params=pltpu.CompilerParams(
            dimension_semantics=("parallel",),
        ),
        cost_estimate=pl.CostEstimate(
            flops=flops, transcendentals=0, bytes_accessed=bytes_accessed,
        ),
    )(xp, w1, b1, w2, b2, w3p, b3p)

    # Slice off batch + lane padding before returning.
    return out[:B, :out_dim]


def init_params(key, latent_dim, hidden_dim, output_dim):
    # Deterministic synthetic params (Kaiming-uniform-ish like nn.Linear defaults).
    # Kept in f32: precision target here is the f32 reference; switch operands
    # to bf16 (keeping preferred_element_type=f32) only when precision allows.
    def linear(key, fan_in, fan_out):
        kw, kb = jax.random.split(key)
        bound = 1.0 / jnp.sqrt(fan_in)
        w = jax.random.uniform(kw, (fan_in, fan_out), jnp.float32, -bound, bound)
        b = jax.random.uniform(kb, (1, fan_out), jnp.float32, -bound, bound)
        return w, b

    k1, k2, k3 = jax.random.split(key, 3)
    w1, b1 = linear(k1, latent_dim, hidden_dim)
    w2, b2 = linear(k2, hidden_dim, hidden_dim)
    w3, b3 = linear(k3, hidden_dim, output_dim)
    return (w1, b1, w2, b2, w3, b3)


def reference_forward(x, params):
    w1, b1, w2, b2, w3, b3 = params
    h = jnp.maximum(x @ w1 + b1, 0.0)
    h = jnp.maximum(h @ w2 + b2, 0.0)
    return h @ w3 + b3


if __name__ == "__main__":
    latent_dim, hidden_dim, output_dim = 16, 32, 64
    batch = 8

    key = jax.random.PRNGKey(0)
    kx, kp = jax.random.split(key)
    x = jax.random.normal(kx, (batch, latent_dim), jnp.float32)
    params = init_params(kp, latent_dim, hidden_dim, output_dim)

    out = decoder_forward(x, params)
    jax.block_until_ready(out)

    ref = reference_forward(x, params)
    assert out.shape == (batch, output_dim)
    assert jnp.allclose(out, ref, atol=1e-5, rtol=1e-5)

    print("KERNEL_OK")
</pallas_src>

<mosaic_0001>
module attributes {stable_mosaic.version = 11 : i64} {
  func.func @decoder_kernel(%arg0: i32, %arg1: memref<8x16xf32, #tpu.memory_space<vmem>>, %arg2: memref<16x32xf32, #tpu.memory_space<vmem>>, %arg3: memref<1x32xf32, #tpu.memory_space<vmem>>, %arg4: memref<32x32xf32, #tpu.memory_space<vmem>>, %arg5: memref<1x32xf32, #tpu.memory_space<vmem>>, %arg6: memref<32x128xf32, #tpu.memory_space<vmem>>, %arg7: memref<1x128xf32, #tpu.memory_space<vmem>>, %arg8: memref<8x128xf32, #tpu.memory_space<vmem>>) attributes {dimension_semantics = [#tpu.dimension_semantics<parallel>], iteration_bounds = array<i64: 1>, scalar_prefetch = 0 : i64, scratch_operands = 0 : i64, tpu.core_type = #tpu.core_type<tc>, window_params = [{transform_indices = @transform_0, window_bounds = array<i64: 8, 16>}, {pipeline_mode = #tpu.pipeline_mode<synchronous>, transform_indices = @transform_1, window_bounds = array<i64: 16, 32>}, {pipeline_mode = #tpu.pipeline_mode<synchronous>, transform_indices = @transform_2, window_bounds = array<i64: 1, 32>}, {pipeline_mode = #tpu.pipeline_mode<synchronous>, transform_indices = @transform_3, window_bounds = array<i64: 32, 32>}, {pipeline_mode = #tpu.pipeline_mode<synchronous>, transform_indices = @transform_4, window_bounds = array<i64: 1, 32>}, {pipeline_mode = #tpu.pipeline_mode<synchronous>, transform_indices = @transform_5, window_bounds = array<i64: 32, 128>}, {pipeline_mode = #tpu.pipeline_mode<synchronous>, transform_indices = @transform_6, window_bounds = array<i64: 1, 128>}, {transform_indices = @transform_7, window_bounds = array<i64: 8, 128>}]} {
    %c0 = arith.constant 0 : index
    %c0_0 = arith.constant 0 : index
    %0 = vector.load %arg1[%c0, %c0_0] : memref<8x16xf32, #tpu.memory_space<vmem>>, vector<8x16xf32>
    %c0_1 = arith.constant 0 : index
    %c0_2 = arith.constant 0 : index
    %1 = vector.load %arg2[%c0_1, %c0_2] : memref<16x32xf32, #tpu.memory_space<vmem>>, vector<16x32xf32>
    %cst = arith.constant dense<0.000000e+00> : vector<8x32xf32>
    %2 = tpu.matmul %0, %1, %cst {dimension_numbers = #tpu.dot_dimension_numbers<[1], [0], [0], [1], [0, 0, 1, 1], [], []>} : vector<8x16xf32>, vector<16x32xf32>, vector<8x32xf32> -> vector<8x32xf32>
    %c0_3 = arith.constant 0 : index
    %c0_4 = arith.constant 0 : index
    %3 = vector.load %arg3[%c0_3, %c0_4] : memref<1x32xf32, #tpu.memory_space<vmem>>, vector<1x32xf32>
    %4 = vector.broadcast %3 : vector<1x32xf32> to vector<8x32xf32>
    %5 = arith.addf %2, %4 : vector<8x32xf32>
    %cst_5 = arith.constant 0.000000e+00 : f32
    %6 = vector.broadcast %cst_5 : f32 to vector<8x32xf32>
    %7 = arith.maximumf %5, %6 : vector<8x32xf32>
    %c0_6 = arith.constant 0 : index
    %c0_7 = arith.constant 0 : index
    %8 = vector.load %arg4[%c0_6, %c0_7] : memref<32x32xf32, #tpu.memory_space<vmem>>, vector<32x32xf32>
    %cst_8 = arith.constant dense<0.000000e+00> : vector<8x32xf32>
    %9 = tpu.matmul %7, %8, %cst_8 {dimension_numbers = #tpu.dot_dimension_numbers<[1], [0], [0], [1], [0, 0, 1, 1], [], []>} : vector<8x32xf32>, vector<32x32xf32>, vector<8x32xf32> -> vector<8x32xf32>
    %c0_9 = arith.constant 0 : index
    %c0_10 = arith.constant 0 : index
    %10 = vector.load %arg5[%c0_9, %c0_10] : memref<1x32xf32, #tpu.memory_space<vmem>>, vector<1x32xf32>
    %11 = vector.broadcast %10 : vector<1x32xf32> to vector<8x32xf32>
    %12 = arith.addf %9, %11 : vector<8x32xf32>
    %cst_11 = arith.constant 0.000000e+00 : f32
    %13 = vector.broadcast %cst_11 : f32 to vector<8x32xf32>
    %14 = arith.maximumf %12, %13 : vector<8x32xf32>
    %c0_12 = arith.constant 0 : index
    %c0_13 = arith.constant 0 : index
    %15 = vector.load %arg6[%c0_12, %c0_13] : memref<32x128xf32, #tpu.memory_space<vmem>>, vector<32x128xf32>
    %cst_14 = arith.constant dense<0.000000e+00> : vector<8x128xf32>
    %16 = tpu.matmul %14, %15, %cst_14 {dimension_numbers = #tpu.dot_dimension_numbers<[1], [0], [0], [1], [0, 0, 1, 1], [], []>} : vector<8x32xf32>, vector<32x128xf32>, vector<8x128xf32> -> vector<8x128xf32>
    %c0_15 = arith.constant 0 : index
    %c0_16 = arith.constant 0 : index
    %17 = vector.load %arg7[%c0_15, %c0_16] : memref<1x128xf32, #tpu.memory_space<vmem>>, vector<1x128xf32>
    %18 = vector.broadcast %17 : vector<1x128xf32> to vector<8x128xf32>
    %19 = arith.addf %16, %18 : vector<8x128xf32>
    %c0_17 = arith.constant 0 : index
    %c0_18 = arith.constant 0 : index
    %20 = vector.load %arg8[%c0_17, %c0_18] : memref<8x128xf32, #tpu.memory_space<vmem>>, vector<8x128xf32>
    tpu.vector_store %arg8[%c0_17, %c0_18], %19 {strides = array<i32>} : memref<8x128xf32, #tpu.memory_space<vmem>>, vector<8x128xf32>,
    return
  }
  func.func @transform_0(%arg0: i32) -> (i32, i32) {
    %c0_i32 = arith.constant 0 : i32
    %c0_i32_0 = arith.constant 0 : i32
    return %arg0, %c0_i32 : i32, i32
  }
  func.func @transform_1(%arg0: i32) -> (i32, i32) {
    %c0_i32 = arith.constant 0 : i32
    %c0_i32_0 = arith.constant 0 : i32
    %c0_i32_1 = arith.constant 0 : i32
    return %c0_i32, %c0_i32_0 : i32, i32
  }
  func.func @transform_2(%arg0: i32) -> (i32, i32) {
    %c0_i32 = arith.constant 0 : i32
    %c0_i32_0 = arith.constant 0 : i32
    %c0_i32_1 = arith.constant 0 : i32
    return %c0_i32, %c0_i32_0 : i32, i32
  }
  func.func @transform_3(%arg0: i32) -> (i32, i32) {
    %c0_i32 = arith.constant 0 : i32
    %c0_i32_0 = arith.constant 0 : i32
    %c0_i32_1 = arith.constant 0 : i32
    return %c0_i32, %c0_i32_0 : i32, i32
  }
  func.func @transform_4(%arg0: i32) -> (i32, i32) {
    %c0_i32 = arith.constant 0 : i32
    %c0_i32_0 = arith.constant 0 : i32
    %c0_i32_1 = arith.constant 0 : i32
    return %c0_i32, %c0_i32_0 : i32, i32
  }
  func.func @transform_5(%arg0: i32) -> (i32, i32) {
    %c0_i32 = arith.constant 0 : i32
    %c0_i32_0 = arith.constant 0 : i32
    %c0_i32_1 = arith.constant 0 : i32
    return %c0_i32, %c0_i32_0 : i32, i32
  }
  func.func @transform_6(%arg0: i32) -> (i32, i32) {
    %c0_i32 = arith.constant 0 : i32
    %c0_i32_0 = arith.constant 0 : i32
    %c0_i32_1 = arith.constant 0 : i32
    return %c0_i32, %c0_i32_0 : i32, i32
  }
  func.func @transform_7(%arg0: i32) -> (i32, i32) {
    %c0_i32 = arith.constant 0 : i32
    %c0_i32_0 = arith.constant 0 : i32
    return %arg0, %c0_i32 : i32, i32
  }
}

</mosaic_0001>

<bundles_post_ra>
// kernel: tpu_custom_call.1
= control target key start
LH: loop header
LB: loop body
LE: loop exit
PB: predicated region body
PF: predicated region fallthrough
CT: control target
= control target key end

     0   :  { %12 = vsyncpa [#allocation3], 0  ;;  %s416_s0 = inlined_call_operand.hbm [shape: f32[8,16], index: 0, kind: input, shape index: {}]   ;;  %s417_s1 = inlined_call_operand.hbm [shape: f32[16,32], index: 1, kind: input, shape index: {}]   ;;  %s418_s2 = inlined_call_operand.vmem [shape: f32[1,32], index: 2, kind: input, shape index: {}]   ;;  %s419_s3 = inlined_call_operand.hbm [shape: f32[32,32], index: 3, kind: input, shape index: {}]   ;;  %s420_s4 = inlined_call_operand.vmem [shape: f32[1,32], index: 4, kind: input, shape index: {}]   ;;  %s421_s5 = inlined_call_operand.hbm [shape: f32[32,128], index: 5, kind: input, shape index: {}]   ;;  %s422_s6 = inlined_call_operand.vmem [shape: f32[1,128], index: 6, kind: input, shape index: {}]   ;;  %s423_s7 = inlined_call_operand.hbm [shape: f32[8,128], index: 7, kind: output, shape index: {}]  }
   0x1   :  { %13 = vsyncpa [#allocation6], 0 }
   0x2   :  { %14 = vsyncpa [#allocation9], 0  ;;  %s31_s26 = sshll.u32 %s417_s1, 4  ;;  %s32_s26 = int_to_ptr.hbm [resolvable:$true] %s31_s26 }
   0x3   :  { %15 = vsyncpa [#allocation4], 0  ;;  %s345_s27 = smov [#allocation5]   ;;  %s21_s8 = sshll.u32 %s416_s0, 4  ;;  %s22_s8 = int_to_ptr.hbm [resolvable:$true] %s21_s8 }
   0x4   :  { %s33_s28 = sshll.u32 %s345_s27, 4  ;;  %s346_s9 = smov 128   ;;  %s34_s28 = int_to_ptr.vmem [resolvable:$true] %s33_s28 }
   0x5   :  { %s347_s10 = smov 8   ;;  %s348_s11 = smov [#allocation2]  }
   0x6   :  { %39 = dma.hbm_to_vmem [thread:$0]  %s32_s26, 256, %s34_s28, [#allocation6], %s346_s9, %s346_s9, %s347_s10  }
   0x7   :  { %s23_s12 = sshll.u32 %s348_s11, 4  ;;  %s46_s15 = sshll.u32 %s419_s3, 4  ;;  %s24_s12 = int_to_ptr.vmem [resolvable:$true] %s23_s12  ;;  %s47_s15 = int_to_ptr.hbm [resolvable:$true] %s46_s15 }
   0x8   :  { %26 = dma.hbm_to_vmem [thread:$0]  %s22_s8, 128, %s24_s12, [#allocation3]  }
   0x9   :  { %s61_s17 = sshll.u32 %s421_s5, 4  ;;  %s349_s18 = smov [#allocation7]   ;;  %s62_s17 = int_to_ptr.hbm [resolvable:$true] %s61_s17 }
   0xa   :  { %s48_s19 = sshll.u32 %s349_s18, 4  ;;  %s350_s0 = smov [#allocation8]   ;;  %s49_s19 = int_to_ptr.vmem [resolvable:$true] %s48_s19 }
   0xb   :  { %54 = dma.hbm_to_vmem [thread:$0]  %s47_s15, 512, %s49_s19, [#allocation6], %s346_s9, %s346_s9, %s347_s10  }
   0xc   :  { %s63_s20 = sshll.u32 %s350_s0, 4  ;;  %s64_s20 = int_to_ptr.vmem [resolvable:$true] %s63_s20 }
   0xd   :  { %69 = dma.hbm_to_vmem [thread:$0]  %s62_s17, 512, %s64_s20, [#allocation9], %s346_s9, %s346_s9, %s347_s10  }
   0xe   :  { %337 = dma.done.wait [#allocation3], 128  }
   0xf   :  { %338 = vsyncadd [#allocation3], 4294967168 }
  0x10   :  { %339 = dma.done.wait [#allocation6], 768  }
  0x11   :  { %340 = vsyncadd [#allocation6], 4294966528 }
  0x12   :  { %341 = dma.done.wait [#allocation9], 512  }
  0x13   :  { %342 = vsyncadd [#allocation9], 4294966784  ;;  %v90_v0 = vld [vmem:[#allocation5 + $0x8] sm:$0xff]  ;;  %v89_v1 = vld [vmem:[#allocation5] sm:$0xff]  ;;  %vm95_vm0 = vcmask 130048   ;;  %vm128_vm1 = vcmask 261120  }
  0x14   :  { %113 = vmatpush.msra.mxu0 %v90_v0  ;;  %v88_v2 = vld [vmem:[#allocation2] sm:$0xff]  ;;  %v123_v3 = vld [vmem:[#allocation7 + $0x18] sm:$0xff]  ;;  %v122_v4 = vld [vmem:[#allocation7 + $0x10] sm:$0xff]  ;;  %s351_s24 = smov [#allocation10]   ;;  %s192_s28 = sshll.u32 %s423_s7, 4  ;;  %s193_s28 = int_to_ptr.hbm [resolvable:$true] %s192_s28 }
  0x15   :  { %144 = vmatpush.msra.mxu1 %v123_v3  ;;  %v121_v5 = vld [vmem:[#allocation7 + $0x8] sm:$0xff]  ;;  %v120_v6 = vld [vmem:[#allocation7] sm:$0xff]  ;;  %v156_v7 = vld [vmem:[#allocation8 + $0x18] sm:$0xff]  ;;  %s190_s25 = sshll.u32 %s351_s24, 4  ;;  %s191_s25 = int_to_ptr.vmem [resolvable:$true] %s190_s25 }
  0x16   :  { %114 = vmatpush.msra.mxu0 %v89_v1  ;;  %176 = vmatpush.msra.mxu2 %v156_v7  ;;  %v214_v8 = vld [vmem:[%s418_s2] ss:$0 sm:$0xff]  ;;  %v155_v12 = vld [vmem:[#allocation8 + $0x10] sm:$0xff]  ;;  %v153_v14 = vld [vmem:[#allocation8] sm:$0xff] }
  0x17   :  { %204 = vmatmul.msk.f32.vlgmr.msra.gmra.mxu0 %vm95_vm0, %v88_v2  ;;  %145 = vmatpush.msra.mxu1 %v122_v4  ;;  %v154_v13 = vld [vmem:[#allocation8 + $0x8] sm:$0xff] }
  0x18   :  { %177 = vmatpush.msra.mxu2 %v155_v12  ;;  %v215_v15 = vld [vmem:[%s420_s4] ss:$0 sm:$0xff] }
  0x19   :  { %146 = vmatpush.msra.mxu1 %v121_v5  ;;  %v216_v19 = vld [vmem:[%s422_s6] ss:$0 sm:$0xff] }
  0x1a   :  { %178 = vmatpush.msra.mxu2 %v154_v13 }
  0x1b   :  { %147 = vmatpush.msra.mxu1 %v120_v6 }
  0x1c   :  { %179 = vmatpush.msra.mxu2 %v153_v14 }
  0x94   :  { %v116_v9 = vpop.f32.mrf.mxu0 }
  0x95   :  { %v117_v10 = vadd.f32 %v214_v8, %v116_v9 }
  0x97   :  { %v119_v11 = vmax.f32 %v117_v10, 0.0 }
  0x99   :  { %205 = vmatmul.msk.f32.vlgmr.msra.gmra.mxu1 %vm128_vm1, %v119_v11 }
 0x116   :  { %v149_v16 = vpop.f32.mrf.mxu1 }
 0x117   :  { %v150_v17 = vadd.f32 %v215_v15, %v149_v16 }
 0x119   :  { %v152_v18 = vmax.f32 %v150_v17, 0.0 }
 0x11b   :  { %206 = vmatmul.msk.f32.vlgmr.msra.gmra.mxu2 %vm128_vm1, %v152_v18 }
 0x19e   :  { %v181_v20 = vpop.f32.mrf.mxu2 }
 0x19f   :  { %v182_v21 = vadd.f32 %v216_v19, %v181_v20 }
 0x1a1   :  { %184 = vst [vmem:[#allocation10] sm:$0xff] %v182_v21 }
 0x1a2   :  { %195 = dma.vmem_to_hbm [thread:$0]  %s191_s25, 128, %s193_s28, [#allocation4]  }
 0x1a3   :  { %343 = dma.done.wait [#allocation4], 128  }
 0x1a4   :  { %344 = vsyncadd [#allocation4], 4294967168 }
 0x1a5   :  { %200 = vsyncpa [#allocation3], 1 }
 0x1a6   :  { %201 = vsyncpa [#allocation6], 1 }
 0x1a7   :  { %202 = vsyncpa [#allocation9], 1 }
 0x1a8   :  { %203 = vsyncpa [#allocation4], 1 }

</bundles_post_ra>
